<compile_context>
chip_gen: v7x
topology: tpu7x:2x2x1
jax: 0.10.0
libtpu: 0.0.40
codegen_flags: <defaults>
</compile_context>

<pallas_src>
import functools

import jax
import jax.numpy as jnp
from jax.experimental import pallas as pl
from jax.experimental.pallas import tpu as pltpu


LANES = 128  # pad final output width to a multiple of this for lane-dense stores


def _round_up(x, m):
    return (x + m - 1) // m * m


def _critic_kernel(s_ref, a_ref, w1s_ref, w1a_ref, b1_ref,
                   w2_ref, b2_ref, w3_ref, b3_ref, o_ref):
    # Layer 1: concat-as-split-matmul, bf16 operands, f32 accumulate, ReLU.
    h1 = jnp.dot(s_ref[...], w1s_ref[...], preferred_element_type=jnp.float32)
    h1 = h1 + jnp.dot(a_ref[...], w1a_ref[...], preferred_element_type=jnp.float32)
    h1 = jnp.maximum(h1 + b1_ref[...], 0.0)

    # Layer 2: (TB, 400) @ (400, 300) + b2, ReLU.
    h2 = jnp.dot(h1.astype(w2_ref.dtype), w2_ref[...],
                 preferred_element_type=jnp.float32)
    h2 = jnp.maximum(h2 + b2_ref[...], 0.0)

    # Layer 3: (TB, 300) @ (300, 128-padded heads) + b3 -> lane-dense store.
    out = jnp.dot(h2.astype(w3_ref.dtype), w3_ref[...],
                  preferred_element_type=jnp.float32)
    o_ref[...] = (out + b3_ref[...]).astype(o_ref.dtype)


def critic_forward(state, action, params, num_heads, *, block_batch=1024):
    """Pallas implementation of Critic.forward."""
    w1s, w1a, b1, w2, b2, w3p, b3p = params
    batch, state_dim = state.shape
    action_dim = action.shape[1]
    n_out_padded = w3p.shape[1]

    # Batch tile: multiple of 8 sublanes, capped so small batches use one block.
    tb = min(block_batch, _round_up(batch, 8))
    grid = (pl.cdiv(batch, tb),)

    # Cast activations to the weight compute dtype (bf16) -> half the HBM bytes
    # moved per tile; matmul accumulates in f32 inside the kernel.
    compute_dtype = w1s.dtype
    state = state.astype(compute_dtype)
    action = action.astype(compute_dtype)

    def tiled(feat):
        # Batch-tiled activation / output blocks.
        return pl.BlockSpec((tb, feat), lambda i: (i, 0))

    def resident(shape):
        # Constant index_map -> weights/biases stay VMEM-resident across tiles.
        return pl.BlockSpec(shape, lambda i: (0, 0))

    out_padded = pl.pallas_call(
        _critic_kernel,
        out_shape=jax.ShapeDtypeStruct((batch, n_out_padded), jnp.float32),
        grid=grid,
        in_specs=[
            tiled(state_dim),
            tiled(action_dim),
            resident(w1s.shape),
            resident(w1a.shape),
            resident(b1.shape),
            resident(w2.shape),
            resident(b2.shape),
            resident(w3p.shape),
            resident(b3p.shape),
        ],
        out_specs=pl.BlockSpec((tb, n_out_padded), lambda i: (i, 0)),
        compiler_params=pltpu.CompilerParams(
            dimension_semantics=("parallel",),
        ),
    )(state, action, w1s, w1a, b1, w2, b2, w3p, b3p)

    # Slice the padded lane-dense output back to the real head count.
    return out_padded[:, :num_heads]


def init_critic_params(key, state_dim, action_dim, num_heads=2,
                       compute_dtype=jnp.bfloat16):
    """Init mirroring nn.Linear defaults (uniform +-1/sqrt(fan_in)).

    Weights stored as (in_features, out_features); l1 split into state/action
    parts; l3 zero-padded to a lane-dense 128-wide output. Weights are cast to
    `compute_dtype` (bf16) for the MXU; biases stay float32.
    """
    h1_dim, h2_dim = 400, 300
    n_out_padded = max(LANES, _round_up(num_heads, LANES))

    key, k1w, k1b, k2w, k2b, k3w, k3b = jax.random.split(key, 7)

    # Layer 1 (fan_in = state_dim + action_dim), split along the input axis.
    fan_in1 = state_dim + action_dim
    bnd1 = 1.0 / (fan_in1 ** 0.5)
    w1 = jax.random.uniform(k1w, (fan_in1, h1_dim), jnp.float32, -bnd1, bnd1)
    b1 = jax.random.uniform(k1b, (1, h1_dim), jnp.float32, -bnd1, bnd1)
    w1s = w1[:state_dim].astype(compute_dtype)
    w1a = w1[state_dim:].astype(compute_dtype)

    # Layer 2.
    bnd2 = 1.0 / (h1_dim ** 0.5)
    w2 = jax.random.uniform(k2w, (h1_dim, h2_dim), jnp.float32, -bnd2, bnd2)
    b2 = jax.random.uniform(k2b, (1, h2_dim), jnp.float32, -bnd2, bnd2)
    w2 = w2.astype(compute_dtype)

    # Layer 3, zero-padded from num_heads to 128 output columns.
    bnd3 = 1.0 / (h2_dim ** 0.5)
    w3 = jax.random.uniform(k3w, (h2_dim, num_heads), jnp.float32, -bnd3, bnd3)
    b3 = jax.random.uniform(k3b, (1, num_heads), jnp.float32, -bnd3, bnd3)
    w3p = jnp.zeros((h2_dim, n_out_padded), jnp.float32).at[:, :num_heads].set(w3)
    b3p = jnp.zeros((1, n_out_padded), jnp.float32).at[:, :num_heads].set(b3)
    w3p = w3p.astype(compute_dtype)

    return (w1s, w1a, b1, w2, b2, w3p, b3p)


def critic_reference(state, action, params, num_heads):
    """Pure-JAX reference with the same bf16-operand / f32-accumulate numerics."""
    w1s, w1a, b1, w2, b2, w3p, b3p = params
    cdt = w1s.dtype
    s = state.astype(cdt)
    a = action.astype(cdt)
    h1 = jnp.dot(s, w1s, preferred_element_type=jnp.float32)
    h1 = h1 + jnp.dot(a, w1a, preferred_element_type=jnp.float32)
    h1 = jnp.maximum(h1 + b1, 0.0)
    h2 = jnp.dot(h1.astype(cdt), w2, preferred_element_type=jnp.float32)
    h2 = jnp.maximum(h2 + b2, 0.0)
    out = jnp.dot(h2.astype(cdt), w3p, preferred_element_type=jnp.float32) + b3p
    return out[:, :num_heads]


if __name__ == "__main__":
    batch, state_dim, action_dim, num_heads = 8, 17, 6, 2

    key = jax.random.PRNGKey(0)
    kp, ks, ka = jax.random.split(key, 3)

    params = init_critic_params(kp, state_dim, action_dim, num_heads)
    state = jax.random.normal(ks, (batch, state_dim), jnp.float32)
    action = jax.random.normal(ka, (batch, action_dim), jnp.float32)

    fwd = functools.partial(critic_forward, num_heads=num_heads)
    out = fwd(state, action, params)
    out = jax.block_until_ready(out)

    ref = critic_reference(state, action, params, num_heads)
    assert out.shape == (batch, num_heads), out.shape
    assert jnp.allclose(out, ref, atol=2e-3, rtol=2e-3), "mismatch vs reference"

    print("KERNEL_OK")
</pallas_src>

<mosaic_0001>
module attributes {stable_mosaic.version = 11 : i64} {
  func.func @_critic_kernel(%arg0: i32, %arg1: memref<8x17xbf16, #tpu.memory_space<vmem>>, %arg2: memref<8x6xbf16, #tpu.memory_space<vmem>>, %arg3: memref<17x400xbf16, #tpu.memory_space<vmem>>, %arg4: memref<6x400xbf16, #tpu.memory_space<vmem>>, %arg5: memref<1x400xf32, #tpu.memory_space<vmem>>, %arg6: memref<400x300xbf16, #tpu.memory_space<vmem>>, %arg7: memref<1x300xf32, #tpu.memory_space<vmem>>, %arg8: memref<300x128xbf16, #tpu.memory_space<vmem>>, %arg9: memref<1x128xf32, #tpu.memory_space<vmem>>, %arg10: memref<8x128xf32, #tpu.memory_space<vmem>>) attributes {dimension_semantics = [#tpu.dimension_semantics<parallel>], iteration_bounds = array<i64: 1>, scalar_prefetch = 0 : i64, scratch_operands = 0 : i64, tpu.core_type = #tpu.core_type<tc>, window_params = [{transform_indices = @transform_0, window_bounds = array<i64: 8, 17>}, {transform_indices = @transform_1, window_bounds = array<i64: 8, 6>}, {pipeline_mode = #tpu.pipeline_mode<synchronous>, transform_indices = @transform_2, window_bounds = array<i64: 17, 400>}, {pipeline_mode = #tpu.pipeline_mode<synchronous>, transform_indices = @transform_3, window_bounds = array<i64: 6, 400>}, {pipeline_mode = #tpu.pipeline_mode<synchronous>, transform_indices = @transform_4, window_bounds = array<i64: 1, 400>}, {pipeline_mode = #tpu.pipeline_mode<synchronous>, transform_indices = @transform_5, window_bounds = array<i64: 400, 300>}, {pipeline_mode = #tpu.pipeline_mode<synchronous>, transform_indices = @transform_6, window_bounds = array<i64: 1, 300>}, {pipeline_mode = #tpu.pipeline_mode<synchronous>, transform_indices = @transform_7, window_bounds = array<i64: 300, 128>}, {pipeline_mode = #tpu.pipeline_mode<synchronous>, transform_indices = @transform_8, window_bounds = array<i64: 1, 128>}, {transform_indices = @transform_9, window_bounds = array<i64: 8, 128>}]} {
    %c0 = arith.constant 0 : index
    %c0_0 = arith.constant 0 : index
    %0 = vector.load %arg1[%c0, %c0_0] : memref<8x17xbf16, #tpu.memory_space<vmem>>, vector<8x17xbf16>
    %c0_1 = arith.constant 0 : index
    %c0_2 = arith.constant 0 : index
    %1 = vector.load %arg3[%c0_1, %c0_2] : memref<17x400xbf16, #tpu.memory_space<vmem>>, vector<17x400xbf16>
    %cst = arith.constant dense<0.000000e+00> : vector<8x400xf32>
    %2 = tpu.matmul %0, %1, %cst {dimension_numbers = #tpu.dot_dimension_numbers<[1], [0], [0], [1], [0, 0, 1, 1], [], []>} : vector<8x17xbf16>, vector<17x400xbf16>, vector<8x400xf32> -> vector<8x400xf32>
    %c0_3 = arith.constant 0 : index
    %c0_4 = arith.constant 0 : index
    %3 = vector.load %arg2[%c0_3, %c0_4] : memref<8x6xbf16, #tpu.memory_space<vmem>>, vector<8x6xbf16>
    %c0_5 = arith.constant 0 : index
    %c0_6 = arith.constant 0 : index
    %4 = vector.load %arg4[%c0_5, %c0_6] : memref<6x400xbf16, #tpu.memory_space<vmem>>, vector<6x400xbf16>
    %cst_7 = arith.constant dense<0.000000e+00> : vector<8x400xf32>
    %5 = tpu.matmul %3, %4, %cst_7 {dimension_numbers = #tpu.dot_dimension_numbers<[1], [0], [0], [1], [0, 0, 1, 1], [], []>} : vector<8x6xbf16>, vector<6x400xbf16>, vector<8x400xf32> -> vector<8x400xf32>
    %6 = arith.addf %2, %5 : vector<8x400xf32>
    %c0_8 = arith.constant 0 : index
    %c0_9 = arith.constant 0 : index
    %7 = vector.load %arg5[%c0_8, %c0_9] : memref<1x400xf32, #tpu.memory_space<vmem>>, vector<1x400xf32>
    %8 = vector.broadcast %7 : vector<1x400xf32> to vector<8x400xf32>
    %9 = arith.addf %6, %8 : vector<8x400xf32>
    %cst_10 = arith.constant 0.000000e+00 : f32
    %10 = vector.broadcast %cst_10 : f32 to vector<8x400xf32>
    %11 = arith.maximumf %9, %10 : vector<8x400xf32>
    %12 = arith.truncf %11 : vector<8x400xf32> to vector<8x400xbf16>
    %c0_11 = arith.constant 0 : index
    %c0_12 = arith.constant 0 : index
    %13 = vector.load %arg6[%c0_11, %c0_12] : memref<400x300xbf16, #tpu.memory_space<vmem>>, vector<400x300xbf16>
    %cst_13 = arith.constant dense<0.000000e+00> : vector<8x300xf32>
    %14 = tpu.matmul %12, %13, %cst_13 {dimension_numbers = #tpu.dot_dimension_numbers<[1], [0], [0], [1], [0, 0, 1, 1], [], []>} : vector<8x400xbf16>, vector<400x300xbf16>, vector<8x300xf32> -> vector<8x300xf32>
    %c0_14 = arith.constant 0 : index
    %c0_15 = arith.constant 0 : index
    %15 = vector.load %arg7[%c0_14, %c0_15] : memref<1x300xf32, #tpu.memory_space<vmem>>, vector<1x300xf32>
    %16 = vector.broadcast %15 : vector<1x300xf32> to vector<8x300xf32>
    %17 = arith.addf %14, %16 : vector<8x300xf32>
    %cst_16 = arith.constant 0.000000e+00 : f32
    %18 = vector.broadcast %cst_16 : f32 to vector<8x300xf32>
    %19 = arith.maximumf %17, %18 : vector<8x300xf32>
    %20 = arith.truncf %19 : vector<8x300xf32> to vector<8x300xbf16>
    %c0_17 = arith.constant 0 : index
    %c0_18 = arith.constant 0 : index
    %21 = vector.load %arg8[%c0_17, %c0_18] : memref<300x128xbf16, #tpu.memory_space<vmem>>, vector<300x128xbf16>
    %cst_19 = arith.constant dense<0.000000e+00> : vector<8x128xf32>
    %22 = tpu.matmul %20, %21, %cst_19 {dimension_numbers = #tpu.dot_dimension_numbers<[1], [0], [0], [1], [0, 0, 1, 1], [], []>} : vector<8x300xbf16>, vector<300x128xbf16>, vector<8x128xf32> -> vector<8x128xf32>
    %c0_20 = arith.constant 0 : index
    %c0_21 = arith.constant 0 : index
    %23 = vector.load %arg9[%c0_20, %c0_21] : memref<1x128xf32, #tpu.memory_space<vmem>>, vector<1x128xf32>
    %24 = vector.broadcast %23 : vector<1x128xf32> to vector<8x128xf32>
    %25 = arith.addf %22, %24 : vector<8x128xf32>
    %c0_22 = arith.constant 0 : index
    %c0_23 = arith.constant 0 : index
    %26 = vector.load %arg10[%c0_22, %c0_23] : memref<8x128xf32, #tpu.memory_space<vmem>>, vector<8x128xf32>
    tpu.vector_store %arg10[%c0_22, %c0_23], %25 {strides = array<i32>} : memref<8x128xf32, #tpu.memory_space<vmem>>, vector<8x128xf32>,
    return
  }
  func.func @transform_0(%arg0: i32) -> (i32, i32) {
    %c0_i32 = arith.constant 0 : i32
    %c0_i32_0 = arith.constant 0 : i32
    return %arg0, %c0_i32 : i32, i32
  }
  func.func @transform_1(%arg0: i32) -> (i32, i32) {
    %c0_i32 = arith.constant 0 : i32
    %c0_i32_0 = arith.constant 0 : i32
    return %arg0, %c0_i32 : i32, i32
  }
  func.func @transform_2(%arg0: i32) -> (i32, i32) {
    %c0_i32 = arith.constant 0 : i32
    %c0_i32_0 = arith.constant 0 : i32
    %c0_i32_1 = arith.constant 0 : i32
    return %c0_i32, %c0_i32_0 : i32, i32
  }
  func.func @transform_3(%arg0: i32) -> (i32, i32) {
    %c0_i32 = arith.constant 0 : i32
    %c0_i32_0 = arith.constant 0 : i32
    %c0_i32_1 = arith.constant 0 : i32
    return %c0_i32, %c0_i32_0 : i32, i32
  }
  func.func @transform_4(%arg0: i32) -> (i32, i32) {
    %c0_i32 = arith.constant 0 : i32
    %c0_i32_0 = arith.constant 0 : i32
    %c0_i32_1 = arith.constant 0 : i32
    return %c0_i32, %c0_i32_0 : i32, i32
  }
  func.func @transform_5(%arg0: i32) -> (i32, i32) {
    %c0_i32 = arith.constant 0 : i32
    %c0_i32_0 = arith.constant 0 : i32
    %c0_i32_1 = arith.constant 0 : i32
    return %c0_i32, %c0_i32_0 : i32, i32
  }
  func.func @transform_6(%arg0: i32) -> (i32, i32) {
    %c0_i32 = arith.constant 0 : i32
    %c0_i32_0 = arith.constant 0 : i32
    %c0_i32_1 = arith.constant 0 : i32
    return %c0_i32, %c0_i32_0 : i32, i32
  }
  func.func @transform_7(%arg0: i32) -> (i32, i32) {
    %c0_i32 = arith.constant 0 : i32
    %c0_i32_0 = arith.constant 0 : i32
    %c0_i32_1 = arith.constant 0 : i32
    return %c0_i32, %c0_i32_0 : i32, i32
  }
  func.func @transform_8(%arg0: i32) -> (i32, i32) {
    %c0_i32 = arith.constant 0 : i32
    %c0_i32_0 = arith.constant 0 : i32
    %c0_i32_1 = arith.constant 0 : i32
    return %c0_i32, %c0_i32_0 : i32, i32
  }
  func.func @transform_9(%arg0: i32) -> (i32, i32) {
    %c0_i32 = arith.constant 0 : i32
    %c0_i32_0 = arith.constant 0 : i32
    return %arg0, %c0_i32 : i32, i32
  }
}

</mosaic_0001>

<bundles_post_ra>
// kernel: tpu_custom_call.1
= control target key start
LH: loop header
LB: loop body
LE: loop exit
PB: predicated region body
PF: predicated region fallthrough
CT: control target
= control target key end

     0   :  { %14 = vsyncpa [#allocation3], 0  ;;  %s2053_s0 = inlined_call_operand.hbm [shape: bf16[8,17], index: 0, kind: input, shape index: {}]   ;;  %s2054_s1 = inlined_call_operand.hbm [shape: bf16[8,6], index: 1, kind: input, shape index: {}]   ;;  %s2055_s2 = inlined_call_operand.hbm [shape: bf16[17,400], index: 2, kind: input, shape index: {}]   ;;  %s2056_s3 = inlined_call_operand.hbm [shape: bf16[6,400], index: 3, kind: input, shape index: {}]   ;;  %s2057_s4 = inlined_call_operand.vmem [shape: f32[1,400], index: 4, kind: input, shape index: {}]   ;;  %s2058_s5 = inlined_call_operand.hbm [shape: bf16[400,300], index: 5, kind: input, shape index: {}]   ;;  %s2059_s6 = inlined_call_operand.vmem [shape: f32[1,300], index: 6, kind: input, shape index: {}]   ;;  %s2060_s7 = inlined_call_operand.hbm [shape: bf16[300,128], index: 7, kind: input, shape index: {}]   ;;  %s2061_s8 = inlined_call_operand.vmem [shape: f32[1,128], index: 8, kind: input, shape index: {}]   ;;  %s2062_s9 = inlined_call_operand.hbm [shape: f32[8,128], index: 9, kind: output, shape index: {}]  }
   0x1   :  { %15 = vsyncpa [#allocation6], 0 }
   0x2   :  { %16 = vsyncpa [#allocation9], 0 }
   0x3   :  { %17 = vsyncpa [#allocation12], 0 }
   0x4   :  { %18 = vsyncpa [#allocation4], 0  ;;  %s1841_s30 = smov [#allocation5]   ;;  %s1842_s11 = smov [#allocation8]  }
   0x5   :  { %s35_s10 = sshll.u32 %s1841_s30, 4  ;;  %s57_s12 = sshll.u32 %s1842_s11, 4  ;;  %s36_s10 = int_to_ptr.vmem [resolvable:$true] %s35_s10  ;;  %s58_s12 = int_to_ptr.vmem [resolvable:$true] %s57_s12 }
   0x6   :  { %s1677_s15 = scalar_lea.hbm %s2054_s1, 64 }
   0x7   :  { %p1678_p0 = scmp.ne.s32.totalorder %s2054_s1, %s1677_s15  ;;  %p1681_p1 = scmp.lt.u32.totalorder %s1677_s15, %s2054_s1 }
   0x9   :  { %p1683_p2 = pnand %p1681_p1, %p1678_p0 }
   0xb   :  { %1686 = shalt.err (!%p1683_p2)
}
   0xc   :  { %s1687_s20 = scalar_lea.vmem %s36_s10, 64  ;;  %p1692_p4 = scmp.lt.s32.totalorder %s36_s10, %s36_s10 }
   0xd   :  { %p1688_p3 = scmp.ne.s32.totalorder %s36_s10, %s1687_s20  ;;  %p1693_p5 = scmp.lt.s32.totalorder %s1687_s20, %s1687_s20 }
   0xf   :  { %p1694_p6 = por %p1693_p5, %p1692_p4 }
  0x11   :  { %p1695_p7 = pnand %p1694_p6, %p1688_p3 }
  0x13   :  { %1698 = shalt.err (!%p1695_p7)
}
  0x14   :  { %38 = dma.hbm_to_vmem [thread:$0]  %s2054_s1, 64, %s36_s10, [#allocation6]  }
  0x15   :  { %s1699_s25 = scalar_lea.hbm %s2056_s3, 256 }
  0x16   :  { %p1700_p8 = scmp.ne.s32.totalorder %s2056_s3, %s1699_s25  ;;  %p1703_p9 = scmp.lt.u32.totalorder %s1699_s25, %s2056_s3 }
  0x18   :  { %p1705_p10 = pnand %p1703_p9, %p1700_p8 }
  0x1a   :  { %1708 = shalt.err (!%p1705_p10)
}
  0x1b   :  { %s1709_s30 = scalar_lea.vmem %s58_s12, 256  ;;  %p1714_p12 = scmp.lt.s32.totalorder %s58_s12, %s58_s12 }
  0x1c   :  { %p1710_p11 = scmp.ne.s32.totalorder %s58_s12, %s1709_s30  ;;  %p1715_p13 = scmp.lt.s32.totalorder %s1709_s30, %s1709_s30 }
  0x1e   :  { %p1716_p0 = por %p1715_p13, %p1714_p12 }
  0x20   :  { %p1717_p1 = pnand %p1716_p0, %p1710_p11 }
  0x22   :  { %1720 = shalt.err (!%p1717_p1)
}
  0x23   :  { %60 = dma.hbm_to_vmem [thread:$0]  %s2056_s3, 256, %s58_s12, [#allocation9]  }
  0x24   :  { %s1843_s11 = smov [#allocation2]   ;;  %s1844_s14 = smov [#allocation7]  }
  0x25   :  { %s25_s13 = sshll.u32 %s1843_s11, 4  ;;  %s44_s15 = sshll.u32 %s1844_s14, 4  ;;  %s26_s13 = int_to_ptr.vmem [resolvable:$true] %s25_s13  ;;  %s1931_s15 = int_to_ptr.vmem [resolvable:$true] %s44_s15 }
  0x26   :  { %s1721_s18 = scalar_lea.hbm %s2053_s0, 64 }
  0x27   :  { %p1722_p2 = scmp.ne.s32.totalorder %s2053_s0, %s1721_s18  ;;  %p1725_p3 = scmp.lt.u32.totalorder %s1721_s18, %s2053_s0 }
  0x29   :  { %p1727_p4 = pnand %p1725_p3, %p1722_p2 }
  0x2b   :  { %1730 = shalt.err (!%p1727_p4)
}
  0x2c   :  { %s1731_s3 = scalar_lea.vmem %s26_s13, 64  ;;  %p1736_p6 = scmp.lt.s32.totalorder %s26_s13, %s26_s13 }
  0x2d   :  { %p1732_p5 = scmp.ne.s32.totalorder %s26_s13, %s1731_s3  ;;  %p1737_p7 = scmp.lt.s32.totalorder %s1731_s3, %s1731_s3 }
  0x2f   :  { %p1738_p8 = por %p1737_p7, %p1736_p6 }
  0x31   :  { %p1739_p9 = pnand %p1738_p8, %p1732_p5 }
  0x33   :  { %1742 = shalt.err (!%p1739_p9)
}
  0x34   :  { %28 = dma.hbm_to_vmem [thread:$0]  %s2053_s0, 64, %s26_s13, [#allocation3]  }
  0x35   :  { %s1743_s26 = scalar_lea.hbm %s2055_s2, 768 }
  0x36   :  { %p1744_p10 = scmp.ne.s32.totalorder %s2055_s2, %s1743_s26  ;;  %p1747_p11 = scmp.lt.u32.totalorder %s1743_s26, %s2055_s2 }
  0x38   :  { %p1749_p12 = pnand %p1747_p11, %p1744_p10 }
  0x3a   :  { %1752 = shalt.err (!%p1749_p12)
}
  0x3b   :  { %s1753_s1 = scalar_lea.vmem %s1931_s15, 768  ;;  %p1758_p0 = scmp.lt.s32.totalorder %s1931_s15, %s1931_s15 }
  0x3c   :  { %p1754_p13 = scmp.ne.s32.totalorder %s1931_s15, %s1753_s1  ;;  %p1759_p1 = scmp.lt.s32.totalorder %s1753_s1, %s1753_s1 }
  0x3e   :  { %p1760_p2 = por %p1759_p1, %p1758_p0 }
  0x40   :  { %p1761_p3 = pnand %p1760_p2, %p1754_p13 }
  0x42   :  { %1764 = shalt.err (!%p1761_p3)
}
  0x43   :  { %s1845_s0 = smov 256   ;;  %s1846_s10 = smov 16  }
  0x44   :  { %50 = dma.hbm_to_vmem [thread:$0]  %s2055_s2, 768, %s1931_s15, [#allocation6], %s1845_s0, %s1845_s0, %s1846_s10  }
  0x45   :  { %s1847_s14 = smov [#allocation10]   ;;  %s1765_s19 = scalar_lea.hbm %s2058_s5, 9600 }
  0x46   :  { %s68_s16 = sshll.u32 %s1847_s14, 4  ;;  %p1766_p4 = scmp.ne.s32.totalorder %s2058_s5, %s1765_s19  ;;  %s69_s16 = int_to_ptr.vmem [resolvable:$true] %s68_s16 }
  0x47   :  { %p1769_p5 = scmp.lt.u32.totalorder %s1765_s19, %s2058_s5 }
  0x49   :  { %p1771_p6 = pnand %p1769_p5, %p1766_p4 }
  0x4b   :  { %1774 = shalt.err (!%p1771_p6)
}
  0x4c   :  { %s1775_s12 = scalar_lea.vmem %s69_s16, 9600  ;;  %p1780_p8 = scmp.lt.s32.totalorder %s69_s16, %s69_s16 }
  0x4d   :  { %p1776_p7 = scmp.ne.s32.totalorder %s69_s16, %s1775_s12  ;;  %p1781_p9 = scmp.lt.s32.totalorder %s1775_s12, %s1775_s12 }
  0x4f   :  { %p1782_p10 = por %p1781_p9, %p1780_p8 }
  0x51   :  { %p1783_p11 = pnand %p1782_p10, %p1776_p7 }
  0x53   :  { %1786 = shalt.err (!%p1783_p11)
}
  0x54   :  { %s1848_s2 = smov 192   ;;  %s1849_s15 = smov 12  }
  0x55   :  { %74 = dma.hbm_to_vmem [thread:$0]  %s2058_s5, 9600, %s69_s16, [#allocation9], %s1848_s2, %s1848_s2, %s1849_s15  }
  0x56   :  { %s1850_s25 = smov [#allocation11]   ;;  %s1787_s29 = scalar_lea.hbm %s2060_s7, 2432 }
  0x57   :  { %s82_s26 = sshll.u32 %s1850_s25, 4  ;;  %p1788_p12 = scmp.ne.s32.totalorder %s2060_s7, %s1787_s29  ;;  %s83_s26 = int_to_ptr.vmem [resolvable:$true] %s82_s26 }
  0x58   :  { %p1791_p13 = scmp.lt.u32.totalorder %s1787_s29, %s2060_s7 }
  0x5a   :  { %p1793_p0 = pnand %p1791_p13, %p1788_p12 }
  0x5c   :  { %1796 = shalt.err (!%p1793_p0)
}
  0x5d   :  { %s1797_s11 = scalar_lea.vmem %s83_s26, 2432  ;;  %p1802_p2 = scmp.lt.s32.totalorder %s83_s26, %s83_s26 }
  0x5e   :  { %p1798_p1 = scmp.ne.s32.totalorder %s83_s26, %s1797_s11  ;;  %p1803_p3 = scmp.lt.s32.totalorder %s1797_s11, %s1797_s11 }
  0x60   :  { %p1804_p4 = por %p1803_p3, %p1802_p2 }
  0x62   :  { %p1805_p5 = pnand %p1804_p4, %p1798_p1 }
  0x64   :  { %1808 = shalt.err (!%p1805_p5)
}
  0x65   :  { %s1851_s5 = smov 64   ;;  %s1852_s13 = smov 4  }
  0x66   :  { %88 = dma.hbm_to_vmem [thread:$0]  %s2060_s7, 2432, %s83_s26, [#allocation12], %s1851_s5, %s1851_s5, %s1852_s13  }
  0x67   :  { %1831 = dma.done.wait [#allocation3], 64  }
  0x68   :  { %1832 = vsyncadd [#allocation3], 4294967232 }
  0x69   :  { %1833 = dma.done.wait [#allocation6], 832  }
  0x6a   :  { %1834 = vsyncadd [#allocation6], 4294966464 }
  0x6b   :  { %1835 = dma.done.wait [#allocation9], 9856  }
  0x6c   :  { %1836 = vsyncadd [#allocation9], 4294957440 }
  0x6d   :  { %1837 = dma.done.wait [#allocation12], 2432  }
  0x6e   :  { %1838 = vsyncadd [#allocation12], 4294964864  ;;  %v1853_v0 = vmov 0   ;;  %vm263_vm0 = vcmask 1040384   ;;  %v1544_v1 = vld [vmem:[#allocation7 + $0x4] ss:$16 sps:$4 sm:$0xff]  }
  0x6f   :  { %179 = vmatprep.mubr.bf16.mxu1 %v1853_v0  ;;  %310 = vmatprep.mubr.bf16.mxu0 %v1853_v0  ;;  %vm134_vm1 = vcmask 1042432   ;;  %v265_v2 = vsel %vm263_vm0, 65535, %v1853_v0  ;;  %v118_v3 = vld [vmem:[#allocation8] sm:$0x77]  ;;  %v115_v5 = vld [vmem:[#allocation7 + $0x20] sm:$0x11] }
  0x70   :  { %v1547_v4 = vld [vmem:[#allocation7] ss:$16 sps:$4 sm:$0xff]   ;;  %278 = vmatprep.subr.bf16.mxu0 %v1544_v1  ;;  %v1349_v6 = vcombine.high %v118_v3, %v118_v3  ;;  %v1348_v7 = vcombine.low %v118_v3, %v118_v3  ;;  %v1361_v8 = vcombine.high %v115_v5, %v115_v5  ;;  %v1360_v9 = vcombine.low %v115_v5, %v115_v5  ;;  %v119_v10 = vld [vmem:[#allocation8 + $0x8] sm:$0x77]  ;;  %v116_v21 = vld [vmem:[#allocation7 + $0x28] sm:$0x11] }
  0x71   :  { %279 = vmatpush1.bf16.msra.mxu0 %v1547_v4  ;;  %v1351_v11 = vcombine.high %v119_v10, %v119_v10  ;;  %v1350_v12 = vcombine.low %v119_v10, %v119_v10  ;;  %v117_v15 = vld [vmem:[#allocation5] sm:$0xf]  ;;  %vm130_vm2 = vcmask 48128   ;;  %v110_v17 = vld [vmem:[#allocation2] sm:$0xf]  ;;  %vm259_vm3 = vcmask 138240  }
  0x72   :  { %1352 = vmatprep.subr.msk.bf16.mxu1 %vm134_vm1, %v1349_v6  ;;  %v136_v13 = vsel %vm134_vm1, %v1348_v7, 0  ;;  %v270_v14 = vand.u32 %v1361_v8, %v265_v2  ;;  %v267_v16 = vand.u32 %v1360_v9, %v265_v2  ;;  %v1555_v18 = vld [vmem:[#allocation7 + $0xc] ss:$16 sps:$4 sm:$0xff]   ;;  %v1560_v19 = vld [vmem:[#allocation10 + $0x4] ss:$12 sps:$4 sm:$0xff]   ;;  %v1363_v24 = vcombine.high %v116_v21, %v116_v21  ;;  %s1856_s20 = smov [#allocation13]  }
  0x73   :  { %148 = vmatpush1.bf16.msra.mxu1 %v136_v13  ;;  %v142_v20 = vsel %vm134_vm1, %v1350_v12, 0  ;;  %v1558_v22 = vld [vmem:[#allocation10] ss:$12 sps:$4 sm:$0xff]   ;;  %v1563_v23 = vld [vmem:[#allocation10 + $0x1c] ss:$12 sps:$4 sm:$0xff]   ;;  %v1362_v28 = vcombine.low %v116_v21, %v116_v21  ;;  %v362_v12 = vlaneseq  ;;  %vm911_vm4 = vcmask 130048  }
  0x74   :  { %280 = vmatprep.subr.bf16.mxu0 %v270_v14  ;;  %1354 = vmatprep.subr.msk.bf16.mxu1 %vm134_vm1, %v1351_v11  ;;  %v1561_v25 = vld [vmem:[#allocation10 + $0x18] ss:$12 sps:$4 sm:$0xff]   ;;  %v1566_v26 = vld [vmem:[#allocation10 + $0x34] ss:$12 sps:$4 sm:$0xff]   ;;  %v276_v29 = vand.u32 %v1363_v24, %v265_v2  ;;  %v1564_v30 = vld [vmem:[#allocation10 + $0x30] ss:$12 sps:$4 sm:$0xff]  }
  0x75   :  { %281 = vmatpush1.bf16.msra.mxu0 %v267_v16  ;;  %v1553_v27 = vld [vmem:[#allocation7 + $0x8] ss:$16 sps:$4 sm:$0xff]   ;;  %v273_v32 = vand.u32 %v1362_v28, %v265_v2  ;;  %v1572_v35 = vld [vmem:[#allocation10 + $0x64] ss:$12 sps:$4 sm:$0xff]   ;;  %v1590_v37 = vld [vmem:[#allocation10 + $0xe0] ss:$12 sps:$4 sm:$0xff]  }
  0x76   :  { %1353 = vmatmul.mubr.msk.bf16.vlgmr.msra.gmra.mrb[0].mxu1 %vm130_vm2, %v117_v15  ;;  %915 = vmatprep.subr.bf16.mxu0 %v1560_v19  ;;  %v1569_v31 = vld [vmem:[#allocation10 + $0x4c] ss:$12 sps:$4 sm:$0xff]   ;;  %v1585_v33 = vld [vmem:[#allocation10 + $0xc8] ss:$12 sps:$4 sm:$0xff]   ;;  %v1576_v44 = vld [vmem:[#allocation10 + $0x90] ss:$12 sps:$4 sm:$0xff]  }
  0x77   :  { %189 = vmatpush1.bf16.msra.mxu1 %v142_v20  ;;  %220 = vmatprep.mubr.bf16.mxu1 %v1853_v0  ;;  %v1567_v34 = vld [vmem:[#allocation10 + $0x48] ss:$12 sps:$4 sm:$0xff]   ;;  %v1570_v38 = vld [vmem:[#allocation10 + $0x60] ss:$12 sps:$4 sm:$0xff]   ;;  %v1595_v41 = vld [vmem:[#allocation10 + $0xf8] ss:$12 sps:$4 sm:$0xff]  }
  0x78   :  { %1364 = vmatmul.mubr.msk.bf16.vlgmr.msra.gmra.mrb[0].mxu0 %vm259_vm3, %v110_v17  ;;  %319 = vmatprep.subr.bf16.mxu1 %v1555_v18  ;;  %v1586_v36 = vld [vmem:[#allocation10 + $0x8] ss:$12 sps:$4 sm:$0xff]   ;;  %v1591_v40 = vld [vmem:[#allocation10 + $0x20] ss:$12 sps:$4 sm:$0xff]   ;;  %v1573_v42 = vld [vmem:[#allocation10 + $0x78] ss:$12 sps:$4 sm:$0xff]  }
  0x79   :  { %916 = vmatpush1.bf16.msra.mxu0 %v1558_v22  ;;  %v1575_v39 = vld [vmem:[#allocation10 + $0x7c] ss:$12 sps:$4 sm:$0xff]   ;;  %v1578_v43 = vld [vmem:[#allocation10 + $0x94] ss:$12 sps:$4 sm:$0xff]   ;;  %v1596_v45 = vld [vmem:[#allocation10 + $0x38] ss:$12 sps:$4 sm:$0xff]  }
  0x7a   :  { %917 = vmatprep.subr.bf16.mxu0 %v1563_v23  ;;  %v1581_v46 = vld [vmem:[#allocation10 + $0xac] ss:$12 sps:$4 sm:$0xff]   ;;  %v1600_v47 = vld [vmem:[#allocation10 + $0x110] ss:$12 sps:$4 sm:$0xff]   ;;  %v1605_v49 = vld [vmem:[#allocation10 + $0x128] ss:$12 sps:$4 sm:$0xff]  }
  0x7b   :  { %v1601_v48 = vld [vmem:[#allocation10 + $0x50] ss:$12 sps:$4 sm:$0xff]   ;;  %v1579_v50 = vld [vmem:[#allocation10 + $0xa8] ss:$12 sps:$4 sm:$0xff]   ;;  %v1582_v53 = vld [vmem:[#allocation10 + $0xc0] ss:$12 sps:$4 sm:$0xff]  }
  0x7c   :  { %v1584_v51 = vld [vmem:[#allocation10 + $0xc4] ss:$12 sps:$4 sm:$0xff]   ;;  %v1606_v52 = vld [vmem:[#allocation10 + $0x68] ss:$12 sps:$4 sm:$0xff]   ;;  %v1599_v58 = vld [vmem:[#allocation10 + $0x10c] ss:$12 sps:$4 sm:$0xff]  }
  0x7d   :  { %918 = vmatpush1.bf16.msra.mxu0 %v1561_v25  ;;  %v1589_v54 = vld [vmem:[#allocation10 + $0xdc] ss:$12 sps:$4 sm:$0xff]   ;;  %v1587_v55 = vld [vmem:[#allocation10 + $0xd8] ss:$12 sps:$4 sm:$0xff]   ;;  %v1594_v56 = vld [vmem:[#allocation10 + $0xf4] ss:$12 sps:$4 sm:$0xff]  }
  0x7e   :  { %1355 = vmatmul.mubr.msk.bf16.vlgmr.msra.gmra.mrb[4].mxu1 %vm130_vm2, %v117_v15  ;;  %919 = vmatprep.subr.bf16.mxu0 %v1566_v26  ;;  %v1592_v57 = vld [vmem:[#allocation10 + $0xf0] ss:$12 sps:$4 sm:$0xff]   ;;  %v1597_v59 = vld [vmem:[#allocation10 + $0x108] ss:$12 sps:$4 sm:$0xff]   ;;  %v1602_v61 = vld [vmem:[#allocation10 + $0x120] ss:$12 sps:$4 sm:$0xff]  }
  0x7f   :  { %320 = vmatpush1.bf16.msra.mxu1 %v1553_v27  ;;  %351 = vmatprep.mubr.bf16.mxu1 %v1853_v0  ;;  %v1604_v60 = vld [vmem:[#allocation10 + $0x124] ss:$12 sps:$4 sm:$0xff]   ;;  %v1609_v62 = vld [vmem:[#allocation10 + $0x13c] ss:$12 sps:$4 sm:$0xff]   ;;  %v1610_v63 = vld [vmem:[#allocation10 + $0x140] ss:$12 sps:$4 sm:$0xff]  }
  0x80   :  { %321 = vmatprep.subr.bf16.mxu1 %v276_v29  ;;  %v1607_v1 = vld [vmem:[#allocation10 + $0x138] ss:$12 sps:$4 sm:$0xff]   ;;  %v1611_v2 = vld [vmem:[#allocation10 + $0x80] ss:$12 sps:$4 sm:$0xff]   ;;  %v1612_v4 = vld [vmem:[#allocation10 + $0x150] ss:$12 sps:$4 sm:$0xff]  }
  0x81   :  { %920 = vmatpush1.bf16.msra.mxu0 %v1564_v30  ;;  %v1614_v3 = vld [vmem:[#allocation10 + $0x154] ss:$12 sps:$4 sm:$0xff]   ;;  %v1615_v5 = vld [vmem:[#allocation10 + $0x158] ss:$12 sps:$4 sm:$0xff]   ;;  %v1620_v8 = vld [vmem:[#allocation10 + $0x170] ss:$12 sps:$4 sm:$0xff]  }
  0x82   :  { %921 = vmatprep.subr.bf16.mxu0 %v1569_v31  ;;  %v1616_v6 = vld [vmem:[#allocation10 + $0x98] ss:$12 sps:$4 sm:$0xff]   ;;  %v1617_v9 = vld [vmem:[#allocation10 + $0x168] ss:$12 sps:$4 sm:$0xff]   ;;  %v1621_v10 = vld [vmem:[#allocation10 + $0xb0] ss:$12 sps:$4 sm:$0xff]  }
  0x83   :  { %322 = vmatpush1.bf16.msra.mxu1 %v273_v32  ;;  %v1619_v7 = vld [vmem:[#allocation10 + $0x16c] ss:$12 sps:$4 sm:$0xff]   ;;  %v1624_v11 = vld [vmem:[#allocation10 + $0x184] ss:$12 sps:$4 sm:$0xff]   ;;  %v2000_v13 = vshrl.u32 %v362_v12, 7  ;;  %vm1245_vm5 = vcmask 1045504  }
  0x84   :  { %1464 = vmatprep.subr.bf16.mxu1 %v1585_v33  ;;  %v2006_v15 = vld [vmem:[%s2057_s4] sm:$0xf]  ;;  %vm1855_vm6 = vmmov 0   ;;  %vm1241_vm7 = vcmask 359424   ;;  %s1336_s21 = sshll.u32 %s1856_s20, 4  ;;  %s1337_s21 = int_to_ptr.vmem [resolvable:$true] %s1336_s21 }
  0x85   :  { %922 = vmatpush1.bf16.msra.mxu0 %v1567_v34  ;;  %v364_v14 = vsub.s32 0, %v2000_v13  ;;  %v368_v16 = vsub.s32 1, %v2000_v13  ;;  %s1809_s22 = scalar_lea.vmem %s1337_s21, 128  ;;  %p1814_p7 = scmp.lt.s32.totalorder %s1337_s21, %s1337_s21 }
  0x86   :  { %1365 = vmatmul.mubr.msk.bf16.vlgmr.msra.gmra.mrb[8].mxu1 %vm259_vm3, %v110_v17  ;;  %923 = vmatprep.subr.bf16.mxu0 %v1572_v35  ;;  %p1810_p6 = scmp.ne.s32.totalorder %s1337_s21, %s1809_s22  ;;  %p1815_p8 = scmp.lt.s32.totalorder %s1809_s22, %s1809_s22 }
  0x87   :  { %1465 = vmatpush3.bf16.msra.mxu1 %v1586_v36  ;;  %v365_v19 = vrot.slane %v2006_v15, %v364_v14  ;;  %v369_v22 = vrot.slane %v2006_v15, %v368_v16  ;;  %v1622_v36 = vld [vmem:[#allocation10 + $0x180] ss:$12 sps:$4 sm:$0xff]  }
  0x88   :  { %1466 = vmatprep.subr.bf16.mxu1 %v1590_v37  ;;  %v1625_v37 = vld [vmem:[#allocation10 + $0x188] ss:$12 sps:$4 sm:$0xff]   ;;  %p1816_p9 = por %p1815_p8, %p1814_p7 }
  0x89   :  { %924 = vmatpush1.bf16.msra.mxu0 %v1570_v38 }
  0x8a   :  { %925 = vmatprep.subr.bf16.mxu0 %v1575_v39  ;;  %p1817_p10 = pnand %p1816_p9, %p1810_p6 }
  0x8b   :  { %1467 = vmatpush3.bf16.msra.mxu1 %v1591_v40  ;;  %v1628_v40 = vld [vmem:[#allocation10 + $0x19c] ss:$12 sps:$4 sm:$0xff]  }
  0x8c   :  { %1468 = vmatprep.subr.bf16.mxu1 %v1595_v41 }
  0x8d   :  { %926 = vmatpush1.bf16.msra.mxu0 %v1573_v42  ;;  %v376_v42 = vsub.s32 3, %v2000_v13 }
  0x8e   :  { %927 = vmatprep.subr.bf16.mxu0 %v1578_v43  ;;  %v1626_v43 = vld [vmem:[#allocation10 + $0x198] ss:$12 sps:$4 sm:$0xff]  }
  0x8f   :  { %1469 = vmatpush3.bf16.msra.mxu1 %v1596_v45  ;;  %v1632_v45 = vld [vmem:[#allocation10 + $0x1b4] ss:$12 sps:$4 sm:$0xff]  }
  0x90   :  { %1470 = vmatprep.subr.bf16.mxu1 %v1600_v47  ;;  %v377_v47 = vrot.slane %v2006_v15, %v376_v42 }
  0x91   :  { %928 = vmatpush1.bf16.msra.mxu0 %v1576_v44  ;;  %v1629_v44 = vld [vmem:[#allocation10 + $0x1a0] ss:$12 sps:$4 sm:$0xff]  }
  0x92   :  { %929 = vmatprep.subr.bf16.mxu0 %v1581_v46 }
  0x93   :  { %1471 = vmatpush3.bf16.msra.mxu1 %v1601_v48 }
  0x94   :  { %1472 = vmatprep.subr.bf16.mxu1 %v1605_v49 }
  0x95   :  { %930 = vmatpush1.bf16.msra.mxu0 %v1579_v50  ;;  %v1630_v50 = vld [vmem:[#allocation10 + $0x1b0] ss:$12 sps:$4 sm:$0xff]  }
  0x96   :  { %931 = vmatprep.subr.bf16.mxu0 %v1584_v51  ;;  %v1633_v51 = vld [vmem:[#allocation10 + $0x1b8] ss:$12 sps:$4 sm:$0xff]  }
  0x97   :  { %1473 = vmatpush3.bf16.msra.mxu1 %v1606_v52 }
  0x98   :  { %1474 = vmatprep.subr.bf16.mxu1 %v1610_v63  ;;  %v1641_v63 = vld [vmem:[#allocation10 + $0x1e8] ss:$12 sps:$4 sm:$0xff]  }
  0x99   :  { %932 = vmatpush1.bf16.msra.mxu0 %v1582_v53 }
  0x9a   :  { %933 = vmatprep.subr.bf16.mxu0 %v1589_v54  ;;  %v1636_v54 = vld [vmem:[#allocation10 + $0x1cc] ss:$12 sps:$4 sm:$0xff]  }
  0x9b   :  { %1475 = vmatpush3.bf16.msra.mxu1 %v1611_v2  ;;  %v1642_v2 = vld [vmem:[#allocation10 + $0x1f8] ss:$12 sps:$4 sm:$0xff]  }
  0x9c   :  { %1476 = vmatprep.subr.bf16.mxu1 %v1615_v5  ;;  %v1648_v5 = vld [vmem:[#allocation10 + $0x214] ss:$12 sps:$4 sm:$0xff]  }
  0x9d   :  { %934 = vmatpush1.bf16.msra.mxu0 %v1587_v55 }
  0x9e   :  { %935 = vmatprep.subr.bf16.mxu0 %v1594_v56 }
  0x9f   :  { %1477 = vmatpush3.bf16.msra.mxu1 %v1616_v6  ;;  %v1646_v6 = vld [vmem:[#allocation10 + $0x210] ss:$12 sps:$4 sm:$0xff]  }
  0xa0   :  { %1478 = vmatprep.subr.bf16.mxu1 %v1620_v8 }
  0xa1   :  { %936 = vmatpush1.bf16.msra.mxu0 %v1592_v57  ;;  %v1634_v57 = vld [vmem:[#allocation10 + $0x1c8] ss:$12 sps:$4 sm:$0xff]  }
  0xa2   :  { %937 = vmatprep.subr.bf16.mxu0 %v1599_v58  ;;  %v1637_v58 = vld [vmem:[#allocation10 + $0x1d0] ss:$12 sps:$4 sm:$0xff]  }
  0xa3   :  { %1479 = vmatpush3.bf16.msra.mxu1 %v1621_v10  ;;  %v1650_v10 = vld [vmem:[#allocation10 + $0x228] ss:$12 sps:$4 sm:$0xff]  }
  0xa4   :  { %1037 = vmatprep.subr.bf16.mxu1 %v1853_v0 }
  0xa5   :  { %938 = vmatpush1.bf16.msra.mxu0 %v1597_v59 }
  0xa6   :  { %939 = vmatprep.subr.bf16.mxu0 %v1604_v60  ;;  %v1640_v60 = vld [vmem:[#allocation10 + $0x1e4] ss:$12 sps:$4 sm:$0xff]  }
  0xa9   :  { %940 = vmatpush1.bf16.msra.mxu0 %v1602_v61 }
  0xaa   :  { %941 = vmatprep.subr.bf16.mxu0 %v1609_v62  ;;  %v1638_v62 = vld [vmem:[#allocation10 + $0x1e0] ss:$12 sps:$4 sm:$0xff]  }
  0xad   :  { %942 = vmatpush1.bf16.msra.mxu0 %v1607_v1  ;;  %v1644_v1 = vld [vmem:[#allocation10 + $0x1fc] ss:$12 sps:$4 sm:$0xff]  }
  0xae   :  { %943 = vmatprep.subr.bf16.mxu0 %v1614_v3  ;;  %v1645_v3 = vld [vmem:[#allocation10 + $0x200] ss:$12 sps:$4 sm:$0xff]  }
  0xb1   :  { %944 = vmatpush1.bf16.msra.mxu0 %v1612_v4  ;;  %v372_v4 = vsub.s32 2, %v2000_v13 }
  0xb2   :  { %945 = vmatprep.subr.bf16.mxu0 %v1619_v7  ;;  %v1649_v7 = vld [vmem:[#allocation10 + $0x218] ss:$12 sps:$4 sm:$0xff]  }
  0xb3   :  { %v373_v8 = vrot.slane %v2006_v15, %v372_v4 }
  0xb5   :  { %946 = vmatpush1.bf16.msra.mxu0 %v1617_v9  ;;  %v1652_v9 = vld [vmem:[#allocation10 + $0x22c] ss:$12 sps:$4 sm:$0xff]  }
  0xb6   :  { %956 = vmatprep.subr.bf16.mxu0 %v1624_v11  ;;  %v1653_v11 = vld [vmem:[#allocation10 + $0x230] ss:$12 sps:$4 sm:$0xff]  }
 0x149   :  { %v181_v17 = vpop.f32.mrb[0].mxu1 }
 0x14a   :  { %v183_v18 = vpop.f32.mrb[1].mxu1 }
 0x14b   :  { %v185_v20 = vpop.f32.mrb[2].mxu1  ;;  %v312_v21 = vpop.f32.mrb[0].mxu0 }
 0x14c   :  { %v186_v23 = vpop.f32.mrb[3].mxu1  ;;  %v313_v24 = vadd.f32 %v312_v21, %v181_v17  ;;  %v314_v25 = vpop.f32.mrb[1].mxu0  ;;  %v1656_v17 = vld [vmem:[#allocation10 + $0x244] ss:$12 sps:$4 sm:$0xff]   ;;  %v1658_v21 = vld [vmem:[#allocation11 + $0x40] sm:$0xff]  }
 0x14d   :  { %v315_v26 = vadd.f32 %v314_v25, %v183_v18  ;;  %v316_v27 = vpop.f32.mrb[2].mxu0  ;;  %v1654_v18 = vld [vmem:[#allocation10 + $0x240] ss:$12 sps:$4 sm:$0xff]  }
 0x14e   :  { %v382_v28 = vadd.f32 %v365_v19, %v313_v24  ;;  %v317_v29 = vpop.f32.mrb[3].mxu0  ;;  %v1657_v19 = vld [vmem:[#allocation10 + $0x248] ss:$12 sps:$4 sm:$0xff]   ;;  %v1660_v23 = vld [vmem:[#allocation11 + $0x48] sm:$0xff]   ;;  %v1854_v24 = vmov 0.0  }
 0x14f   :  { %v383_v30 = vadd.f32 %v369_v22, %v315_v26  ;;  %v1659_v22 = vld [vmem:[#allocation11] sm:$0xff]   ;;  %v1661_v25 = vld [vmem:[#allocation11 + $0x8] sm:$0xff]   ;;  %v1662_v27 = vld [vmem:[#allocation11 + $0x50] sm:$0xff]  }
 0x150   :  { %v386_v31 = vmax.f32 %v382_v28, 0.0  ;;  %v1668_v26 = vld [vmem:[#allocation11 + $0x80] sm:$0xff]   ;;  %v1664_v28 = vld [vmem:[#allocation11 + $0x58] sm:$0xff]  }
 0x151   :  { %v387_v32 = vmax.f32 %v383_v30, 0.0  ;;  %v222_v33 = vpop.f32.mrb[4].mxu1  ;;  %v1665_v29 = vld [vmem:[#allocation11 + $0x18] sm:$0xff]   ;;  %v1666_v30 = vld [vmem:[#allocation11 + $0x60] sm:$0xff]  }
 0x152   :  { %v224_v34 = vpop.f32.mrb[5].mxu1  ;;  %v390_v39 = vpack.c.bf16 %v386_v31, %v386_v31  ;;  %v1667_v31 = vld [vmem:[#allocation11 + $0x20] sm:$0xff]  }
 0x153   :  { %v391_v35 = vpack.c.bf16 %v387_v32, %v387_v32  ;;  %v226_v38 = vpop.f32.mrb[6].mxu1  ;;  %v1669_v32 = vld [vmem:[#allocation11 + $0x68] sm:$0xff]  }
 0x154   :  { %v227_v41 = vpop.f32.mrb[7].mxu1 }
 0x155   :  { %947 = vmatprep.mubr.bf16.mxu0 %v391_v35  ;;  %1029 = vmatprep.mubr.bf16.mxu1 %v391_v35  ;;  %v1672_v35 = vld [vmem:[#allocation11 + $0x70] sm:$0xff]  }
 0x156   :  { %948 = vmatmul.mubr.bf16.vlgmr.msra.gmra.mrb[4].mxu0 %v390_v39  ;;  %1030 = vmatmul.mubr.bf16.vlgmr.msra.gmra.mrb[12].mxu1 %v390_v39  ;;  %v1675_v39 = vld [vmem:[#allocation11 + $0x78] sm:$0xff]  }
 0x157   :  { %957 = vmatpush1.bf16.msra.mxu0 %v1622_v36  ;;  %1038 = vmatpush1.bf16.msra.mxu1 %v1625_v37  ;;  %v1673_v36 = vld [vmem:[#allocation11 + $0x30] sm:$0xff]  }
 0x158   :  { %958 = vmatprep.subr.bf16.mxu0 %v1628_v40  ;;  %1039 = vmatprep.subr.bf16.mxu1 %v1853_v0  ;;  %v1674_v37 = vld [vmem:[#allocation11 + $0x90] sm:$0x3f]   ;;  %v1676_v40 = vld [vmem:[#allocation11 + $0x38] sm:$0xff]  }
 0x159   :  { %v353_v46 = vpop.f32.mrb[8].mxu1  ;;  %v1247_v38 = vsel %vm1245_vm5, %v1674_v37, 0 }
 0x15a   :  { %v354_v48 = vadd.f32 %v353_v46, %v222_v33  ;;  %v355_v49 = vpop.f32.mrb[9].mxu1  ;;  %v1670_v33 = vld [vmem:[#allocation11 + $0x28] sm:$0xff]   ;;  %v494_v46 = vld [vmem:[%s2059_s6] sm:$0x7] }
 0x15b   :  { %959 = vmatpush1.bf16.msra.mxu0 %v1626_v43  ;;  %1040 = vmatpush1.bf16.msra.mxu1 %v1629_v44  ;;  %v356_v52 = vadd.f32 %v355_v49, %v224_v34  ;;  %v357_v53 = vpop.f32.mrb[10].mxu1  ;;  %v1671_v34 = vld [vmem:[#allocation11 + $0x88] sm:$0xff]   ;;  %v503_v49 = vrot.slane %v494_v46, %v368_v16 }
 0x15c   :  { %960 = vmatprep.subr.bf16.mxu0 %v1632_v45  ;;  %1041 = vmatprep.subr.bf16.mxu1 %v1853_v0  ;;  %v358_v55 = vpop.f32.mrb[11].mxu1  ;;  %v384_v12 = vadd.f32 %v373_v8, %v354_v48  ;;  %v499_v48 = vrot.slane %v494_v46, %v364_v14 }
 0x15d   :  { %v385_v56 = vadd.f32 %v377_v47, %v356_v52  ;;  %v507_v47 = vrot.slane %v494_v46, %v372_v4 }
 0x15e   :  { %v388_v20 = vmax.f32 %v384_v12, 0.0 }
 0x15f   :  { %961 = vmatpush1.bf16.msra.mxu0 %v1630_v50  ;;  %1042 = vmatpush1.bf16.msra.mxu1 %v1633_v51  ;;  %v389_v59 = vmax.f32 %v385_v56, 0.0 }
 0x160   :  { %962 = vmatprep.subr.bf16.mxu0 %v1636_v54  ;;  %1043 = vmatprep.subr.bf16.mxu1 %v1853_v0  ;;  %v392_v15 = vpack.c.bf16 %v388_v20, %v388_v20 }
 0x161   :  { %v393_v61 = vpack.c.bf16 %v389_v59, %v389_v59 }
 0x163   :  { %963 = vmatpush1.bf16.msra.mxu0 %v1634_v57  ;;  %1044 = vmatpush1.bf16.msra.mxu1 %v1637_v58 }
 0x164   :  { %964 = vmatprep.subr.bf16.mxu0 %v1640_v60  ;;  %1045 = vmatprep.subr.bf16.mxu1 %v1853_v0 }
 0x165   :  { %1441 = vmatprep.mubr.msk.bf16.mxu0 %vm911_vm4, %v393_v61  ;;  %1442 = vmatprep.mubr.msk.bf16.mxu1 %vm911_vm4, %v393_v61 }
 0x167   :  { %965 = vmatpush1.bf16.msra.mxu0 %v1638_v62  ;;  %1046 = vmatpush1.bf16.msra.mxu1 %v1641_v63 }
 0x168   :  { %966 = vmatprep.subr.bf16.mxu0 %v1644_v1  ;;  %1047 = vmatprep.subr.bf16.mxu1 %v1853_v0 }
 0x16b   :  { %967 = vmatpush1.bf16.msra.mxu0 %v1642_v2  ;;  %1048 = vmatpush1.bf16.msra.mxu1 %v1645_v3 }
 0x16c   :  { %968 = vmatprep.subr.bf16.mxu0 %v1648_v5  ;;  %1049 = vmatprep.subr.bf16.mxu1 %v1853_v0 }
 0x16f   :  { %969 = vmatpush1.bf16.msra.mxu0 %v1646_v6  ;;  %1050 = vmatpush1.bf16.msra.mxu1 %v1649_v7  ;;  %v1443_v6 = vld [vmem:[%s2061_s8] ss:$0 sm:$0xff] }
 0x170   :  { %970 = vmatprep.subr.bf16.mxu0 %v1652_v9  ;;  %1051 = vmatprep.subr.bf16.mxu1 %v1853_v0 }
 0x173   :  { %971 = vmatpush1.bf16.msra.mxu0 %v1650_v10  ;;  %1052 = vmatpush1.bf16.msra.mxu1 %v1653_v11 }
 0x174   :  { %972 = vmatprep.subr.bf16.mxu0 %v1656_v17  ;;  %1053 = vmatprep.subr.bf16.mxu1 %v1853_v0  ;;  %v1663_v0 = vld [vmem:[#allocation11 + $0x10] sm:$0xff]  }
 0x177   :  { %973 = vmatpush1.bf16.msra.mxu0 %v1654_v18  ;;  %1054 = vmatpush1.bf16.msra.mxu1 %v1657_v19 }
 0x178   :  { %1512 = vmatprep.subr.bf16.mxu0 %v1854_v24  ;;  %1486 = vmatprep.subr.bf16.mxu1 %v1658_v21 }
 0x17a   :  { %989 = vmatmul.mubr.bf16.vlgmr.msra.gmra.mrb[4].mxu0 %v392_v15  ;;  %1070 = vmatmul.mubr.bf16.vlgmr.msra.gmra.mrb[16].mxu1 %v392_v15 }
 0x17b   :  { %1487 = vmatpush3.bf16.msra.mxu1 %v1659_v22  ;;  %1513 = vmatpush3.bf16.msra.mxu0 %v1668_v26 }
 0x17c   :  { %1488 = vmatprep.subr.bf16.mxu1 %v1660_v23  ;;  %1514 = vmatprep.subr.bf16.mxu0 %v1854_v24 }
 0x17d   :  { %1518 = vmatprep.mubr.msk.bf16.mxu0 %vm1855_vm6, %v1854_v24 }
 0x17f   :  { %1489 = vmatpush3.bf16.msra.mxu1 %v1661_v25  ;;  %1515 = vmatpush3.bf16.msra.mxu0 %v1671_v34 }
 0x180   :  { %1490 = vmatprep.subr.bf16.mxu1 %v1662_v27  ;;  %1516 = vmatprep.subr.bf16.mxu0 %v1854_v24 }
 0x183   :  { %1491 = vmatpush3.bf16.msra.mxu1 %v1663_v0  ;;  %1517 = vmatpush3.bf16.msra.mxu0 %v1247_v38 }
 0x184   :  { %1492 = vmatprep.subr.bf16.mxu1 %v1664_v28 }
 0x187   :  { %1493 = vmatpush3.bf16.msra.mxu1 %v1665_v29 }
 0x188   :  { %1494 = vmatprep.subr.bf16.mxu1 %v1666_v30 }
 0x18b   :  { %1495 = vmatpush3.bf16.msra.mxu1 %v1667_v31 }
 0x18c   :  { %1496 = vmatprep.subr.bf16.mxu1 %v1669_v32 }
 0x18f   :  { %1497 = vmatpush3.bf16.msra.mxu1 %v1670_v33 }
 0x190   :  { %1498 = vmatprep.subr.bf16.mxu1 %v1672_v35 }
 0x193   :  { %1499 = vmatpush3.bf16.msra.mxu1 %v1673_v36 }
 0x194   :  { %1500 = vmatprep.subr.bf16.mxu1 %v1675_v39 }
 0x197   :  { %1501 = vmatpush3.bf16.msra.mxu1 %v1676_v40 }
 0x229   :  { %v1480_v41 = vpop.f32.mrb[12].mxu1 }
 0x22a   :  { %v1481_v42 = vpop.f32.mrb[13].mxu1 }
 0x22b   :  { %v1482_v43 = vadd.f32 %v1481_v42, %v1480_v41  ;;  %v1483_v44 = vpop.f32.mrb[14].mxu1 }
 0x22c   :  { %v1484_v45 = vpop.f32.mrb[15].mxu1 }
 0x22d   :  { %v1032_v50 = vadd.f32 %v1482_v43, %v507_v47 }
 0x24d   :  { %v990_v51 = vpop.f32.mrb[4].mxu0  ;;  %v1071_v52 = vpop.f32.mrb[16].mxu1 }
 0x24e   :  { %v1522_v53 = vadd.f32 %v990_v51, %v499_v48  ;;  %v1072_v54 = vadd.f32 %v1071_v52, %v1032_v50  ;;  %v992_v55 = vpop.f32.mrb[5].mxu0  ;;  %v1073_v56 = vpop.f32.mrb[17].mxu1 }
 0x24f   :  { %v1523_v57 = vadd.f32 %v992_v55, %v503_v49  ;;  %v994_v58 = vpop.f32.mrb[6].mxu0  ;;  %v1074_v59 = vpop.f32.mrb[18].mxu1 }
 0x250   :  { %v1077_v60 = vmax.f32 %v1522_v53, 0.0  ;;  %v1079_v61 = vmax.f32 %v1072_v54, 0.0  ;;  %v995_v62 = vpop.f32.mrb[7].mxu0  ;;  %v1075_v63 = vpop.f32.mrb[19].mxu1 }
 0x251   :  { %v1078_v1 = vmax.f32 %v1523_v57, 0.0 }
 0x252   :  { %v1082_v14 = vpack.c.bf16 %v1079_v61, %v1079_v61  ;;  %v1080_v13 = vpack.c.bf16 %v1077_v60, %v1077_v60 }
 0x253   :  { %v1081_v2 = vpack.c.bf16 %v1078_v1, %v1078_v1 }
 0x254   :  { %1519 = vmatmul.mubr.msk.bf16.vlgmr.msra.gmra.mrb[8].mxu0 %vm1241_vm7, %v1082_v14 }
 0x255   :  { %1281 = vmatprep.mubr.bf16.mxu1 %v1081_v2 }
 0x256   :  { %1282 = vmatmul.mubr.bf16.vlgmr.msra.gmra.mrb[20].mxu1 %v1080_v13 }
 0x327   :  { %v1323_v16 = vpop.f32.mrb[8].mxu0 }
 0x328   :  { %v1520_v3 = vpop.f32.mrb[9].mxu0 }
 0x329   :  { %v1502_v4 = vpop.f32.mrb[20].mxu1  ;;  %v1326_v5 = vpop.f32.mrb[10].mxu0 }
 0x32a   :  { %v1503_v7 = vpop.f32.mrb[21].mxu1  ;;  %v1521_v8 = vpop.f32.mrb[11].mxu0 }
 0x32b   :  { %v1504_v9 = vadd.f32 %v1503_v7, %v1502_v4  ;;  %v1505_v10 = vpop.f32.mrb[22].mxu1 }
 0x32c   :  { %v1506_v11 = vpop.f32.mrb[23].mxu1 }
 0x32d   :  { %v1284_v12 = vadd.f32 %v1504_v9, %v1443_v6 }
 0x32f   :  { %v1324_v17 = vadd.f32 %v1323_v16, %v1284_v12 }
 0x331   :  { %1329 = vst [vmem:[#allocation13] sm:$0xff] %v1324_v17 }
 0x332   :  { %1820 = shalt.err (!%p1817_p10)
}
 0x333   :  { %s1821_s12 = scalar_lea.hbm %s2062_s9, 128 }
 0x334   :  { %p1822_p11 = scmp.ne.s32.totalorder %s2062_s9, %s1821_s12  ;;  %p1825_p12 = scmp.lt.u32.totalorder %s1821_s12, %s2062_s9 }
 0x336   :  { %p1827_p13 = pnand %p1825_p12, %p1822_p11 }
 0x338   :  { %1830 = shalt.err (!%p1827_p13)
}
 0x339   :  { %1339 = dma.vmem_to_hbm [thread:$0]  %s1337_s21, 128, %s2062_s9, [#allocation4]  }
 0x33a   :  { %1839 = dma.done.wait [#allocation4], 128  }
 0x33b   :  { %1840 = vsyncadd [#allocation4], 4294967168 }
 0x33c   :  { %1343 = vsyncpa [#allocation3], 1 }
 0x33d   :  { %1344 = vsyncpa [#allocation6], 1 }
 0x33e   :  { %1345 = vsyncpa [#allocation9], 1 }
 0x33f   :  { %1346 = vsyncpa [#allocation12], 1 }
 0x340   :  { %1347 = vsyncpa [#allocation4], 1 }

</bundles_post_ra>
